<compile_context>
chip_gen: v7x
topology: tpu7x:2x2x1
jax: 0.10.0
libtpu: 0.0.40
codegen_flags: <defaults>
</compile_context>

<pallas_src>
import functools

import jax
import jax.numpy as jnp
from jax.experimental import pallas as pl
from jax.experimental.pallas import tpu as pltpu

LRELU_SLOPE = 0.3
BN_EPS = 1e-5


def _lrelu(x):
    return jnp.where(x > 0, x, LRELU_SLOPE * x)


# --------------------------------------------------------------------------- #
# Kernel A: BN1 affine + LReLU, fused k=3 conv1 (+fused 1x1 shortcut),
#           per-tile channel sum / sumsq of h1 (for BN2 stats).
# --------------------------------------------------------------------------- #
def _kernel_a(x_ref, halo_ref, s1_ref, b1_ref, w_ref, h1_ref, stat_ref, *sc_refs,
              t_tile, c_out, has_shortcut):
    # BN1 affine + LeakyReLU in f32 (inputs may be bf16).
    pre = _lrelu(x_ref[0].astype(jnp.float32) * s1_ref[...] + b1_ref[...])  # (Tt, Cin)

    halo = halo_ref[0, 0]                                     # (2, Cin) f32, pre-activated
    ext = jnp.concatenate([halo[0:1], pre, halo[1:2]], axis=0)        # (Tt+2, Cin)
    # im2col lane-concat -> single MXU matmul (cast once to the matmul dtype).
    # TODO(synk): A/B this against 3 accumulating K=Cin dots via pltpu.roll.
    cat = jnp.concatenate([ext[:t_tile], pre, ext[2:]], axis=-1).astype(w_ref.dtype)
    res = jnp.dot(cat, w_ref[...], preferred_element_type=jnp.float32)  # (Tt, Cout|2Cout)

    h1 = res[:, :c_out]
    # Per-tile channel sum / sum-of-squares (f32, from the f32 accumulator) so
    # BN2 statistics never need to re-read h1 from HBM.
    stat_ref[0, 0] = jnp.concatenate(
        [jnp.sum(h1, axis=0, keepdims=True),
         jnp.sum(h1 * h1, axis=0, keepdims=True)], axis=0)
    h1_ref[0] = h1.astype(h1_ref.dtype)
    if has_shortcut:
        sc_refs[0][0] = res[:, c_out:].astype(sc_refs[0].dtype)


# --------------------------------------------------------------------------- #
# Kernel B: BN2 affine + LReLU, fused k=3 conv2, residual add, MaxPool1d(3),
#           per-tile channel sums of the pooled output (for the AFMS mean).
# --------------------------------------------------------------------------- #
def _kernel_b(h1_ref, halo_ref, sc_ref, s2_ref, b2_ref, w2_ref,
              out_ref, psum_ref, *scratch, t_tile, t_pool, downsample):
    g = _lrelu(h1_ref[0].astype(jnp.float32) * s2_ref[...] + b2_ref[...])   # (Tt, C)

    halo = halo_ref[0, 0]                                     # (2, C) f32
    ext = jnp.concatenate([halo[0:1], g, halo[1:2]], axis=0)            # (Tt+2, C)
    cat = jnp.concatenate([ext[:t_tile], g, ext[2:]], axis=-1).astype(w2_ref.dtype)
    out = jnp.dot(cat, w2_ref[...], preferred_element_type=jnp.float32)
    out = out + sc_ref[0].astype(jnp.float32)                 # residual add (f32)

    if downsample:
        # MaxPool1d(kernel=3, stride=3): stage in VMEM scratch, two elementwise
        # maxima over stride-3 row views (no per-window unroll).
        pool_ref = scratch[0]
        pool_ref[...] = out
        pooled = jnp.maximum(
            jnp.maximum(pool_ref[pl.ds(0, t_pool, stride=3), :],
                        pool_ref[pl.ds(1, t_pool, stride=3), :]),
            pool_ref[pl.ds(2, t_pool, stride=3), :])
    else:
        pooled = out

    psum_ref[0, 0] = jnp.sum(pooled, axis=0, keepdims=True)   # (1, C) f32
    out_ref[0] = pooled.astype(out_ref.dtype)


# --------------------------------------------------------------------------- #
# helpers
# --------------------------------------------------------------------------- #
def _pick_time_tile(T, target, multiple):
    """Largest tile <= target that divides T and is a multiple of `multiple`.
    Falls back to the whole axis (block == full dim is always legal)."""
    # TODO(synk): pad T to a tile-friendly length for very long awkward sequence
    # lengths instead of falling back to the whole axis (VMEM on v7x).
    if T <= target:
        return T
    t = (min(target, T) // multiple) * multiple
    while t >= multiple:
        if T % t == 0:
            return t
        t -= multiple
    return T


def _edge_rows(v_nlc, n_tiles, tile, scale, bias):
    """Activated (affine + LeakyReLU, f32) rows just outside each time tile,
    packed as a single (B, n_tiles, 2, C) array: [:, :, 0] = left halo,
    [:, :, 1] = right halo.  Zero rows stand in for the conv's zero padding."""
    B, _, C = v_nlc.shape
    zero = jnp.zeros((B, 1, C), jnp.float32)
    if n_tiles == 1:
        left = right = zero
    else:
        def act(z):
            return _lrelu(z.astype(jnp.float32) * scale[None, None, :]
                          + bias[None, None, :])
        left = jnp.concatenate(
            [zero, act(v_nlc[:, tile - 1::tile, :][:, :n_tiles - 1, :])], axis=1)
        right = jnp.concatenate(
            [act(v_nlc[:, tile::tile, :][:, :n_tiles - 1, :]), zero], axis=1)
    return jnp.stack([left, right], axis=2)                   # (B, n_tiles, 2, C)


# --------------------------------------------------------------------------- #
# public wrapper
# --------------------------------------------------------------------------- #
def rawnet_basic_block(x_ncl, params, *, downsample=True, time_tile=1024,
                       compute_dtype=jnp.bfloat16,
                       vmem_limit_bytes=48 * 1024 * 1024):
    """RawNetBasicBlock forward (training-mode BatchNorm).  x_ncl: (B, inplanes, T).
    Activations/weights are stored in `compute_dtype` (bf16 by default); matmul
    accumulation, activation math and all statistics are f32."""
    B, c_in, T = x_ncl.shape
    c_out = params['w1'].shape[0]
    has_shortcut = c_in != c_out
    t_pool_total = T // 3 if downsample else T

    cdtype = jnp.dtype(compute_dtype)
    row_mult = 8 if cdtype.itemsize >= 4 else 16              # sublane packing

    cp_kwargs = dict(dimension_semantics=("parallel", "parallel"))
    if vmem_limit_bytes is not None:
        cp_kwargs["vmem_limit_bytes"] = int(vmem_limit_bytes)
    cparams = pltpu.CompilerParams(**cp_kwargs)

    # ---- BN1 batch statistics (biased, f32) over the raw NCL input ---------- #
    x_f32 = x_ncl.astype(jnp.float32)
    mean1 = jnp.mean(x_f32, axis=(0, 2))
    var1 = jnp.mean(x_f32 * x_f32, axis=(0, 2)) - mean1 * mean1
    scale1 = params['bn1_g'] * jax.lax.rsqrt(var1 + BN_EPS)
    bias1 = params['bn1_b'] - mean1 * scale1

    # Single fused XLA pass: NCL -> NLC transpose + cast to compute dtype.
    x = jnp.transpose(x_ncl, (0, 2, 1)).astype(cdtype)        # (B, T, Cin)

    # conv weights (Cout, Cin, 3) -> fused im2col matrices (3*Cin, Cout), plus
    # the 1x1 shortcut folded into extra columns (centre-tap rows only).
    w1c = jnp.transpose(params['w1'], (2, 1, 0)).reshape(3 * c_in, c_out)
    if has_shortcut:
        wsc_pad = jnp.zeros((3 * c_in, c_out), jnp.float32)
        wsc_pad = wsc_pad.at[c_in:2 * c_in].set(jnp.transpose(params['w_sc']))
        w1f = jnp.concatenate([w1c, wsc_pad], axis=1).astype(cdtype)   # (3Cin, 2Cout)
    else:
        w1f = w1c.astype(cdtype)
    w2c = jnp.transpose(params['w2'], (2, 1, 0)).reshape(3 * c_out, c_out).astype(cdtype)

    # --------------------- kernel A: conv1 (+ fused shortcut) --------------- #
    tta = _pick_time_tile(T, time_tile, row_mult)
    nta = T // tta
    halo1 = _edge_rows(x, nta, tta, scale1, bias1)            # (B, nta, 2, Cin) f32

    a_in = [x, halo1, scale1.reshape(1, c_in), bias1.reshape(1, c_in), w1f]
    a_specs = [
        pl.BlockSpec((1, tta, c_in), lambda b, t: (b, t, 0)),
        pl.BlockSpec((1, 1, 2, c_in), lambda b, t: (b, t, 0, 0)),
        pl.BlockSpec((1, c_in), lambda b, t: (0, 0)),
        pl.BlockSpec((1, c_in), lambda b, t: (0, 0)),
        pl.BlockSpec(w1f.shape, lambda b, t: (0, 0)),
    ]
    a_out_shape = [jax.ShapeDtypeStruct((B, T, c_out), cdtype),
                   jax.ShapeDtypeStruct((B, nta, 2, c_out), jnp.float32)]
    a_out_specs = [pl.BlockSpec((1, tta, c_out), lambda b, t: (b, t, 0)),
                   pl.BlockSpec((1, 1, 2, c_out), lambda b, t: (b, t, 0, 0))]
    if has_shortcut:
        a_out_shape.append(jax.ShapeDtypeStruct((B, T, c_out), cdtype))
        a_out_specs.append(pl.BlockSpec((1, tta, c_out), lambda b, t: (b, t, 0)))

    a_res = pl.pallas_call(
        functools.partial(_kernel_a, t_tile=tta, c_out=c_out,
                          has_shortcut=has_shortcut),
        grid=(B, nta),
        in_specs=a_specs,
        out_specs=tuple(a_out_specs),
        out_shape=tuple(a_out_shape),
        compiler_params=cparams,
    )(*a_in)
    h1, stats = a_res[0], a_res[1]
    shortcut = a_res[2] if has_shortcut else x                # (B, T, Cout), cdtype

    # ---- BN2 statistics from the per-tile sums (tiny (B, nta, 2, C) array) -- #
    n_elem = float(B * T)
    ssum = jnp.sum(stats[:, :, 0, :], axis=(0, 1))
    ssq = jnp.sum(stats[:, :, 1, :], axis=(0, 1))
    mean2 = ssum / n_elem
    var2 = ssq / n_elem - mean2 * mean2
    scale2 = params['bn2_g'] * jax.lax.rsqrt(var2 + BN_EPS)
    bias2 = params['bn2_b'] - mean2 * scale2

    # --------------- kernel B: conv2 + residual + MaxPool1d(3) -------------- #
    ttb = _pick_time_tile(T, time_tile, 3 * row_mult if downsample else row_mult)
    ntb = T // ttb
    tpb = ttb // 3 if downsample else ttb                     # pooled rows per tile
    halo2 = _edge_rows(h1, ntb, ttb, scale2, bias2)           # (B, ntb, 2, Cout) f32

    b_in = [h1, halo2, shortcut,
            scale2.reshape(1, c_out), bias2.reshape(1, c_out), w2c]
    b_specs = [
        pl.BlockSpec((1, ttb, c_out), lambda b, t: (b, t, 0)),
        pl.BlockSpec((1, 1, 2, c_out), lambda b, t: (b, t, 0, 0)),
        pl.BlockSpec((1, ttb, c_out), lambda b, t: (b, t, 0)),
        pl.BlockSpec((1, c_out), lambda b, t: (0, 0)),
        pl.BlockSpec((1, c_out), lambda b, t: (0, 0)),
        pl.BlockSpec((3 * c_out, c_out), lambda b, t: (0, 0)),
    ]
    b_out_shape = (jax.ShapeDtypeStruct((B, t_pool_total, c_out), cdtype),
                   jax.ShapeDtypeStruct((B, ntb, 1, c_out), jnp.float32))
    b_out_specs = (pl.BlockSpec((1, tpb, c_out), lambda b, t: (b, t, 0)),
                   pl.BlockSpec((1, 1, 1, c_out), lambda b, t: (b, t, 0, 0)))
    scratch = [pltpu.VMEM((ttb, c_out), jnp.float32)] if downsample else []

    pooled, psum = pl.pallas_call(
        functools.partial(_kernel_b, t_tile=ttb, t_pool=tpb, downsample=downsample),
        grid=(B, ntb),
        in_specs=b_specs,
        out_specs=b_out_specs,
        out_shape=b_out_shape,
        scratch_shapes=scratch,
        compiler_params=cparams,
    )(*b_in)

    # ---- AFMS: time-mean from the per-tile sums, FC + sigmoid, fused apply -- #
    y_mean = jnp.sum(psum[:, :, 0, :], axis=1) / float(t_pool_total)    # (B, C) f32
    s = jax.nn.sigmoid(y_mean @ params['fc_w'].T + params['fc_b'])       # (B, C)
    # (pooled + alpha) * s  +  NLC->NCL transpose: one fused XLA pass over pooled.
    out_nlc = (pooled.astype(jnp.float32) + params['alpha'][None, None, :]) * s[:, None, :]
    return jnp.transpose(out_nlc, (0, 2, 1))                  # (B, Cout, T_out) f32


# ----------------------------- pure-JAX reference ----------------------------- #
def reference_forward(x, params, *, downsample=True):
    """Mirror of the PyTorch training-mode forward, NCL layout, f32."""
    def bn(v, g, b):
        mean = v.mean(axis=(0, 2), keepdims=True)
        var = ((v - mean) ** 2).mean(axis=(0, 2), keepdims=True)
        return (v - mean) / jnp.sqrt(var + BN_EPS) * g[None, :, None] + b[None, :, None]

    def lrelu(v):
        return jnp.where(v > 0, v, LRELU_SLOPE * v)

    def conv1d(v, w, pad):
        return jax.lax.conv_general_dilated(
            v, w, window_strides=(1,), padding=[(pad, pad)],
            dimension_numbers=('NCH', 'OIH', 'NCH'))

    c_in, c_out = x.shape[1], params['w1'].shape[0]
    out = lrelu(bn(x, params['bn1_g'], params['bn1_b']))
    shortcut = conv1d(out, params['w_sc'][:, :, None], 0) if c_in != c_out else x
    out = conv1d(out, params['w1'], 1)
    out = conv1d(lrelu(bn(out, params['bn2_g'], params['bn2_b'])), params['w2'], 1)
    out = out + shortcut
    if downsample:
        B, C, T = out.shape
        t_out = T // 3
        out = out[:, :, :t_out * 3].reshape(B, C, t_out, 3).max(axis=-1)
    y = out.mean(axis=2)
    y = jax.nn.sigmoid(y @ params['fc_w'].T + params['fc_b'])
    out = out + params['alpha'][None, :, None]
    out = out * y[:, :, None]
    return out


if __name__ == "__main__":
    def make_params(key, inplanes, planes):
        ks = jax.random.split(key, 6)
        p = dict(
            bn1_g=jnp.ones((inplanes,), jnp.float32),
            bn1_b=jnp.zeros((inplanes,), jnp.float32),
            bn2_g=jnp.ones((planes,), jnp.float32),
            bn2_b=jnp.zeros((planes,), jnp.float32),
            w1=0.3 * jax.random.normal(ks[0], (planes, inplanes, 3), jnp.float32),
            w2=0.3 * jax.random.normal(ks[1], (planes, planes, 3), jnp.float32),
            alpha=jnp.ones((planes,), jnp.float32),
            fc_w=0.3 * jax.random.normal(ks[3], (planes, planes), jnp.float32),
            fc_b=0.1 * jax.random.normal(ks[4], (planes,), jnp.float32),
        )
        if inplanes != planes:
            p['w_sc'] = 0.3 * jax.random.normal(ks[2], (planes, inplanes), jnp.float32)
        return p, ks[5]

    B, T = 2, 48      # T chosen so both kernels run multiple time tiles (halos exercised)

    # Config 1: 1x1-conv shortcut (inplanes != planes) + MaxPool1d(3), f32 compute
    # (tight numerical check against the reference).
    params1, k1 = make_params(jax.random.PRNGKey(0), 4, 8)
    x1 = jax.random.normal(k1, (B, 4, T), jnp.float32)
    out1 = jax.block_until_ready(rawnet_basic_block(
        x1, params1, downsample=True, time_tile=24, compute_dtype=jnp.float32))
    ref1 = jax.block_until_ready(reference_forward(x1, params1, downsample=True))
    assert out1.shape == (B, 8, T // 3), out1.shape
    assert jnp.allclose(out1, ref1, rtol=1e-4, atol=1e-4), float(jnp.abs(out1 - ref1).max())

    # Config 2: identity shortcut (inplanes == planes), no downsampling, f32 compute.
    params2, k2 = make_params(jax.random.PRNGKey(1), 8, 8)
    x2 = jax.random.normal(k2, (B, 8, T), jnp.float32)
    out2 = jax.block_until_ready(rawnet_basic_block(
        x2, params2, downsample=False, time_tile=24, compute_dtype=jnp.float32))
    ref2 = jax.block_until_ready(reference_forward(x2, params2, downsample=False))
    assert out2.shape == (B, 8, T), out2.shape
    assert jnp.allclose(out2, ref2, rtol=1e-4, atol=1e-4), float(jnp.abs(out2 - ref2).max())

    # Config 3: bf16 compute-dtype path (default / production setting) — loose
    # sanity check only (bf16 rounding of activations and weights).
    k3 = jax.random.split(k2, 1)[0]
    T3 = 96
    x3 = jax.random.normal(k3, (B, 4, T3), jnp.float32)
    out3 = jax.block_until_ready(rawnet_basic_block(
        x3, params1, downsample=True, time_tile=48, compute_dtype=jnp.bfloat16))
    ref3 = jax.block_until_ready(reference_forward(x3, params1, downsample=True))
    assert out3.shape == (B, 8, T3 // 3), out3.shape
    assert jnp.allclose(out3, ref3, rtol=1e-1, atol=1e-1), float(jnp.abs(out3 - ref3).max())

    print("KERNEL_OK")
</pallas_src>

<mosaic_0001>
module attributes {stable_mosaic.version = 11 : i64} {
  func.func @_kernel_a(%arg0: i32, %arg1: i32, %arg2: memref<1x24x4xf32, #tpu.memory_space<vmem>>, %arg3: memref<1x1x2x4xf32, #tpu.memory_space<vmem>>, %arg4: memref<1x4xf32, #tpu.memory_space<vmem>>, %arg5: memref<1x4xf32, #tpu.memory_space<vmem>>, %arg6: memref<12x16xf32, #tpu.memory_space<vmem>>, %arg7: memref<1x24x8xf32, #tpu.memory_space<vmem>>, %arg8: memref<1x1x2x8xf32, #tpu.memory_space<vmem>>, %arg9: memref<1x24x8xf32, #tpu.memory_space<vmem>>) attributes {dimension_semantics = [#tpu.dimension_semantics<parallel>, #tpu.dimension_semantics<parallel>], iteration_bounds = array<i64: 2, 2>, scalar_prefetch = 0 : i64, scratch_operands = 0 : i64, tpu.core_type = #tpu.core_type<tc>, window_params = [{transform_indices = @transform_0, window_bounds = array<i64: 1, 24, 4>}, {transform_indices = @transform_1, window_bounds = array<i64: 1, 1, 2, 4>}, {pipeline_mode = #tpu.pipeline_mode<synchronous>, transform_indices = @transform_2, window_bounds = array<i64: 1, 4>}, {pipeline_mode = #tpu.pipeline_mode<synchronous>, transform_indices = @transform_3, window_bounds = array<i64: 1, 4>}, {pipeline_mode = #tpu.pipeline_mode<synchronous>, transform_indices = @transform_4, window_bounds = array<i64: 12, 16>}, {transform_indices = @transform_5, window_bounds = array<i64: 1, 24, 8>}, {transform_indices = @transform_6, window_bounds = array<i64: 1, 1, 2, 8>}, {transform_indices = @transform_7, window_bounds = array<i64: 1, 24, 8>}]} {
    %c0 = arith.constant 0 : index
    %c0_0 = arith.constant 0 : index
    %c0_1 = arith.constant 0 : index
    %0 = vector.load %arg2[%c0, %c0_0, %c0_1] : memref<1x24x4xf32, #tpu.memory_space<vmem>>, vector<1x24x4xf32>
    %1 = vector.shape_cast %0 : vector<1x24x4xf32> to vector<24x4xf32>
    %c0_2 = arith.constant 0 : index
    %c0_3 = arith.constant 0 : index
    %2 = vector.load %arg4[%c0_2, %c0_3] : memref<1x4xf32, #tpu.memory_space<vmem>>, vector<1x4xf32>
    %3 = vector.broadcast %2 : vector<1x4xf32> to vector<24x4xf32>
    %4 = arith.mulf %1, %3 : vector<24x4xf32>
    %c0_4 = arith.constant 0 : index
    %c0_5 = arith.constant 0 : index
    %5 = vector.load %arg5[%c0_4, %c0_5] : memref<1x4xf32, #tpu.memory_space<vmem>>, vector<1x4xf32>
    %6 = vector.broadcast %5 : vector<1x4xf32> to vector<24x4xf32>
    %7 = arith.addf %4, %6 : vector<24x4xf32>
    %cst = arith.constant 0.000000e+00 : f32
    %8 = vector.broadcast %cst : f32 to vector<24x4xf32>
    %9 = arith.cmpf ogt, %7, %8 : vector<24x4xf32>
    %cst_6 = arith.constant 3.000000e-01 : f32
    %10 = vector.broadcast %cst_6 : f32 to vector<24x4xf32>
    %11 = arith.mulf %10, %7 : vector<24x4xf32>
    %12 = arith.select %9, %7, %11 : vector<24x4xi1>, vector<24x4xf32>
    %c0_7 = arith.constant 0 : index
    %c0_8 = arith.constant 0 : index
    %c0_9 = arith.constant 0 : index
    %c0_10 = arith.constant 0 : index
    %13 = vector.load %arg3[%c0_7, %c0_8, %c0_9, %c0_10] : memref<1x1x2x4xf32, #tpu.memory_space<vmem>>, vector<1x1x2x4xf32>
    %14 = vector.shape_cast %13 : vector<1x1x2x4xf32> to vector<2x4xf32>
    %15 = vector.extract_strided_slice %14 {offsets = [0, 0], sizes = [1, 4], strides = [1, 1]} : vector<2x4xf32> to vector<1x4xf32>
    %16 = vector.extract_strided_slice %14 {offsets = [1, 0], sizes = [1, 4], strides = [1, 1]} : vector<2x4xf32> to vector<1x4xf32>
    %17 = tpu.concatenate %15, %12, %16 in 0 : vector<1x4xf32>, vector<24x4xf32>, vector<1x4xf32> -> vector<26x4xf32>
    %18 = vector.extract_strided_slice %17 {offsets = [0, 0], sizes = [24, 4], strides = [1, 1]} : vector<26x4xf32> to vector<24x4xf32>
    %19 = vector.extract_strided_slice %17 {offsets = [2, 0], sizes = [24, 4], strides = [1, 1]} : vector<26x4xf32> to vector<24x4xf32>
    %20 = tpu.concatenate %18, %12, %19 in 1 : vector<24x4xf32>, vector<24x4xf32>, vector<24x4xf32> -> vector<24x12xf32>
    %c0_11 = arith.constant 0 : index
    %c0_12 = arith.constant 0 : index
    %21 = vector.load %arg6[%c0_11, %c0_12] : memref<12x16xf32, #tpu.memory_space<vmem>>, vector<12x16xf32>
    %cst_13 = arith.constant dense<0.000000e+00> : vector<24x16xf32>
    %22 = tpu.matmul %20, %21, %cst_13 {dimension_numbers = #tpu.dot_dimension_numbers<[1], [0], [0], [1], [0, 0, 1, 1], [], []>} : vector<24x12xf32>, vector<12x16xf32>, vector<24x16xf32> -> vector<24x16xf32>
    %23 = vector.extract_strided_slice %22 {offsets = [0, 0], sizes = [24, 8], strides = [1, 1]} : vector<24x16xf32> to vector<24x8xf32>
    %cst_14 = arith.constant dense<0.000000e+00> : vector<8xf32>
    %24 = vector.multi_reduction <add>, %23, %cst_14 [0] : vector<24x8xf32> to vector<8xf32>
    %25 = vector.shape_cast %24 : vector<8xf32> to vector<1x8xf32>
    %26 = arith.mulf %23, %23 : vector<24x8xf32>
    %cst_15 = arith.constant dense<0.000000e+00> : vector<8xf32>
    %27 = vector.multi_reduction <add>, %26, %cst_15 [0] : vector<24x8xf32> to vector<8xf32>
    %28 = vector.shape_cast %27 : vector<8xf32> to vector<1x8xf32>
    %29 = tpu.concatenate %25, %28 in 0 : vector<1x8xf32>, vector<1x8xf32> -> vector<2x8xf32>
    %c0_16 = arith.constant 0 : index
    %c0_17 = arith.constant 0 : index
    %c0_18 = arith.constant 0 : index
    %c0_19 = arith.constant 0 : index
    %30 = vector.load %arg8[%c0_16, %c0_17, %c0_18, %c0_19] : memref<1x1x2x8xf32, #tpu.memory_space<vmem>>, vector<1x1x2x8xf32>
    %31 = vector.shape_cast %30 : vector<1x1x2x8xf32> to vector<2x8xf32>
    %32 = vector.shape_cast %29 : vector<2x8xf32> to vector<1x1x2x8xf32>
    tpu.vector_store %arg8[%c0_16, %c0_17, %c0_18, %c0_19], %32 {strides = array<i32>} : memref<1x1x2x8xf32, #tpu.memory_space<vmem>>, vector<1x1x2x8xf32>,
    %c0_20 = arith.constant 0 : index
    %c0_21 = arith.constant 0 : index
    %c0_22 = arith.constant 0 : index
    %33 = vector.load %arg7[%c0_20, %c0_21, %c0_22] : memref<1x24x8xf32, #tpu.memory_space<vmem>>, vector<1x24x8xf32>
    %34 = vector.shape_cast %33 : vector<1x24x8xf32> to vector<24x8xf32>
    %35 = vector.shape_cast %23 : vector<24x8xf32> to vector<1x24x8xf32>
    tpu.vector_store %arg7[%c0_20, %c0_21, %c0_22], %35 {strides = array<i32>} : memref<1x24x8xf32, #tpu.memory_space<vmem>>, vector<1x24x8xf32>,
    %36 = vector.extract_strided_slice %22 {offsets = [0, 8], sizes = [24, 8], strides = [1, 1]} : vector<24x16xf32> to vector<24x8xf32>
    %c0_23 = arith.constant 0 : index
    %c0_24 = arith.constant 0 : index
    %c0_25 = arith.constant 0 : index
    %37 = vector.load %arg9[%c0_23, %c0_24, %c0_25] : memref<1x24x8xf32, #tpu.memory_space<vmem>>, vector<1x24x8xf32>
    %38 = vector.shape_cast %37 : vector<1x24x8xf32> to vector<24x8xf32>
    %39 = vector.shape_cast %36 : vector<24x8xf32> to vector<1x24x8xf32>
    tpu.vector_store %arg9[%c0_23, %c0_24, %c0_25], %39 {strides = array<i32>} : memref<1x24x8xf32, #tpu.memory_space<vmem>>, vector<1x24x8xf32>,
    return
  }
  func.func @transform_0(%arg0: i32, %arg1: i32) -> (i32, i32, i32) {
    %c0_i32 = arith.constant 0 : i32
    %c0_i32_0 = arith.constant 0 : i32
    return %arg0, %arg1, %c0_i32 : i32, i32, i32
  }
  func.func @transform_1(%arg0: i32, %arg1: i32) -> (i32, i32, i32, i32) {
    %c0_i32 = arith.constant 0 : i32
    %c0_i32_0 = arith.constant 0 : i32
    %c0_i32_1 = arith.constant 0 : i32
    return %arg0, %arg1, %c0_i32, %c0_i32_0 : i32, i32, i32, i32
  }
  func.func @transform_2(%arg0: i32, %arg1: i32) -> (i32, i32) {
    %c0_i32 = arith.constant 0 : i32
    %c0_i32_0 = arith.constant 0 : i32
    %c0_i32_1 = arith.constant 0 : i32
    return %c0_i32, %c0_i32_0 : i32, i32
  }
  func.func @transform_3(%arg0: i32, %arg1: i32) -> (i32, i32) {
    %c0_i32 = arith.constant 0 : i32
    %c0_i32_0 = arith.constant 0 : i32
    %c0_i32_1 = arith.constant 0 : i32
    return %c0_i32, %c0_i32_0 : i32, i32
  }
  func.func @transform_4(%arg0: i32, %arg1: i32) -> (i32, i32) {
    %c0_i32 = arith.constant 0 : i32
    %c0_i32_0 = arith.constant 0 : i32
    %c0_i32_1 = arith.constant 0 : i32
    return %c0_i32, %c0_i32_0 : i32, i32
  }
  func.func @transform_5(%arg0: i32, %arg1: i32) -> (i32, i32, i32) {
    %c0_i32 = arith.constant 0 : i32
    %c0_i32_0 = arith.constant 0 : i32
    return %arg0, %arg1, %c0_i32 : i32, i32, i32
  }
  func.func @transform_6(%arg0: i32, %arg1: i32) -> (i32, i32, i32, i32) {
    %c0_i32 = arith.constant 0 : i32
    %c0_i32_0 = arith.constant 0 : i32
    %c0_i32_1 = arith.constant 0 : i32
    return %arg0, %arg1, %c0_i32, %c0_i32_0 : i32, i32, i32, i32
  }
  func.func @transform_7(%arg0: i32, %arg1: i32) -> (i32, i32, i32) {
    %c0_i32 = arith.constant 0 : i32
    %c0_i32_0 = arith.constant 0 : i32
    return %arg0, %arg1, %c0_i32 : i32, i32, i32
  }
}

</mosaic_0001>

<bundles_post_ra>
// kernel: tpu_custom_call.1
= control target key start
LH: loop header
LB: loop body
LE: loop exit
PB: predicated region body
PF: predicated region fallthrough
CT: control target
= control target key end

     0   :  { %s1279_s0 = inlined_call_operand.vmem [shape: f32[2,48,4], index: 0, kind: input, shape index: {}]   ;;  %s1280_s1 = inlined_call_operand.vmem [shape: f32[2,2,2,4], index: 1, kind: input, shape index: {}]   ;;  %s1281_s2 = inlined_call_operand.vmem [shape: f32[1,4], index: 2, kind: input, shape index: {}]   ;;  %s1282_s3 = inlined_call_operand.vmem [shape: f32[1,4], index: 3, kind: input, shape index: {}]   ;;  %s1283_s4 = inlined_call_operand.vmem [shape: f32[12,16], index: 4, kind: input, shape index: {}]   ;;  %s1284_s5 = inlined_call_operand.vmem [shape: f32[2,48,8], index: 5, kind: output, shape index: {0}]   ;;  %s1285_s6 = inlined_call_operand.hbm [shape: f32[2,2,2,8], index: 6, kind: output, shape index: {1}]   ;;  %s1286_s7 = inlined_call_operand.vmem [shape: f32[2,48,8], index: 7, kind: output, shape index: {2}]  }
   0x1   :  { %1290 = sst [smem:[#allocation8_spill]] %s1283_s4 }
   0x2   :  { %13 = vsyncpa [#allocation3], 0 }
   0x3   :  { %15 = vsyncpa [#allocation3 + $0x1], 0  ;;  %s1092_s24 = smov 0   ;;  %s1094_s25 = smov 0  }
   0x4   :  { %s1096_s26 = smov 0   ;;  %s1098_s27 = smov 0  }
   0x5   :  { %s1100_s28 = smov 0   ;;  %s1102_s29 = smov 0  }
   0x6   :  { %s1104_s30 = smov 0   ;;  %s1106_s8 = smov 0  }
   0x7 LB: > { %1291 = sst [smem:[#allocation5_spill]] %s1038_s30  ;;  %s823_s9 = sadd.s32 4294967295, %s1042_s8   ;;  %s1042_s8 = sphi %s1106_s8, %s21_s8   ;;  %s1038_s30 = sphi %s1104_s30, %s1299_s30   ;;  %s1034_s29 = sphi %s1102_s29, %s1304_s29   ;;  %s1030_s28 = sphi %s1100_s28, %s1297_s28   ;;  %s1026_s27 = sphi %s1098_s27, %s1303_s27   ;;  %s1022_s26 = sphi %s1096_s26, %s1302_s26   ;;  %s1018_s25 = sphi %s1094_s25, %s1301_s25   ;;  %s1014_s24 = sphi %s1092_s24, %s1300_s24  }
   0x8   : > { %s824_s10 = sadd.s32 4294967294, %s1042_s8   ;;  %s30_s11 = sadd.s32 1, %s1034_s29 }
   0x9   : > { %p31_p0 = scmp.ge.s32.totalorder %s30_s11, 2  ;;  %s33_s12 = sadd.s32 1, %s1038_s30 }
   0xa   : > { %p199_p1 = scmp.ne.s32.totalorder %s1022_s26, %s1018_s25  ;;  %p200_p2 = scmp.eq.s32.totalorder %s823_s9, 3 }
   0xb   : > { %s1306_s11 = smov (%p31_p0, %s30_s11), 0  ;;  %s1308_s12 = smov (!%p31_p0, %s33_s12), %s1038_s30 }
   0xc   : > { %1292 = sst [smem:[#allocation6_spill]] %s1306_s11  ;;  %s185_s13 = ssub.s32 %s1034_s29, %s1306_s11 }
   0xd   : > { %p1143_p3 = por %p200_p2, %p199_p1  ;;  %p35_p4 = scmp.ge.s32.totalorder %s1308_s12, 2 }
   0xe   : > { %p205_p5 = scmp.ne.s32.totalorder %s1018_s25, %s1014_s24  ;;  %p206_p6 = scmp.eq.s32.totalorder %s824_s10, 3 }
   0xf   : > { %p827_p7 = scmp.ge.s32.totalorder %s1042_s8, 1  ;;  %s1310_s12 = smov (%p35_p4, %s1308_s12), 0 }
  0x10   : > { %1294 = sst [smem:[#allocation7_spill]] %s1310_s12  ;;  %p1152_p8 = por %p206_p6, %p205_p5 }
  0x11   : > { %p285_p9 = scmp.lt.s32.totalorder %s1042_s8, 5  ;;  %s184_s16 = ssub.s32 %s1038_s30, %s1310_s12 }
  0x12   : > { %s189_s17 = sadd.s32 1, %s1022_s26  ;;  %s186_s18 = sor.u32 %s185_s13, %s184_s16 }
  0x13   : > { %p286_p10 = pnand %p827_p7, %p285_p9  ;;  %p187_p11 = scmp.eq.s32.totalorder %s186_s18, 0 }
  0x14   : > { %s347_s20 = smul.u32 (!%p286_p10), 3, %s1026_s27  ;;  %p348_p12 = scmp.lt.s32.totalorder (!%p286_p10), %s1030_s28, 1  ;;  %vm481_vm0 = vcmask (!%p286_p10), 1043456   ;;  %v1044_v2 = vmov (!%p286_p10), 0.0|0.0   ;;  %vm1045_vm1 = vmmov (!%p286_p10), 1   ;;  %vm1046_vm3 = vmmov (!%p286_p10), 0  }
  0x15   : > { %s1161_s19 = scalar_select %p187_p11, %s1022_s26, %s189_s17  }
  0x16   : > { %289 = sbr.rel (%p286_p10) target bundleno = 503 (0x1f7), region = 40  ;;  %p359_p13 = scmp.lt.s32.totalorder (!%p286_p10), %s1026_s27, 1  ;;  %867 = vmatprep.subr.bf16.mxu1 (!%p286_p10), %v1044_v2  ;;  %863 = vmatprep.subr.bf16.mxu0 (!%p286_p10), %v1044_v2  ;;  %vm865_vm2 = vmpackc.low (!%p286_p10), %vm481_vm0, %vm1045_vm1  ;;  %v834_v4 = vld [vmem:[%s1281_s2] ss:$0 sm:$0xff] (!%p286_p10)  ;;  %v1047_v15 = vmov (!%p286_p10), 0.0   ;;  %vm421_vm7 = vcmask (!%p286_p10), 1040384  }
  0x17   : > { %p350_p0 = scmp.lt.s32.totalorder (!%p286_p10), %s347_s20, 5  ;;  %s1296_s4 = sld [smem:[#allocation8_spill]] (!%p286_p10)  ;;  %v835_v5 = vld [vmem:[%s1282_s3] ss:$0 sm:$0xff] (!%p286_p10)  ;;  %857 = vmatprep.mubr.msk.f32.mxu1 (!%p286_p10), %vm1046_vm3, %v1047_v15  ;;  %854 = vmatprep.mubr.msk.f32.mxu0 (!%p286_p10), %vm1046_vm3, %v1047_v15  ;;  %vm444_vm8 = vcmask (!%p286_p10), 1045504   ;;  %vm461_vm9 = vcmask (!%p286_p10), 31744  }
  0x18   : > { %s1048_s30 = smov (!%p286_p10), 4   ;;  %vm465_vm10 = vcmask (!%p286_p10), 64512   ;;  %vm471_vm11 = vcmask (!%p286_p10), 97280   ;;  %s333_s10 = sand.u32 (!%p286_p10), 1, %s1018_s25   ;;  %vm591_vm12 = vcmask (!%p286_p10), 58368  }
  0x19   : > { %s841_s13 = sshll.u32 (!%p286_p10), %s1030_s28, 1 }
  0x1d   : > { %s349_s21 = scalar_select %p348_p12, %s1030_s28, 1  ;;  %v469_v0 = vld [vmem:[%s1296_s4] sm:$0xff]  ;;  %v470_v1 = vld [vmem:[%s1296_s4 + $0x8] sm:$0xf] }
  0x1e   : > { %s1312_s20 = smov (!%p350_p0, %s347_s20), 5  ;;  %v864_v3 = vpack.c.bf16 %v470_v1, %v469_v0 }
  0x1f   : > { %s869_s22 = smul.u32 6, %s349_s21  ;;  %s830_s23 = sshll.u32 %s349_s21, 1 }
  0x20   : > { %s360_s17 = scalar_select %p359_p13, %s1026_s27, 1  ;;  %868 = vmatpush3.bf16.msk.msra.mxu1 %vm865_vm2, %v864_v3  ;;  %866 = vmatpush3.bf16.msk.msra.mxu0 %vm865_vm2, %v864_v3 }
  0x21   : > { %s353_s18 = sadd.s32 %s869_s22, %s1312_s20 }
  0x22   : > { %s1174_s12 = sshll.u32 %s353_s18, 3  ;;  %s362_s9 = sadd.s32 %s830_s23, %s360_s17 }
  0x23   : > { %s355_s16 = scalar_lea.vmem %s1279_s0, %s1174_s12  ;;  %s831_s20 = sshll.u32 %s362_s9, 1 }
  0x24   : > { %v386_v6 = vld [vmem:[%s355_s16 + $0x8] sm:$0xff]  ;;  %v385_v7 = vld [vmem:[%s355_s16] sm:$0xff]  ;;  %v387_v8 = vld [vmem:[%s355_s16 + $0x10] sm:$0xff]  ;;  %s364_s4 = scalar_lea.vmem %s1280_s1, %s831_s20  ;;  %s1049_s23 = smov 8  }
  0x25   : > { %v396_v9 = vmul.f32 %v834_v4, %v386_v6  ;;  %v395_v10 = vmul.f32 %v834_v4, %v385_v7  ;;  %v397_v11 = vmul.f32 %v834_v4, %v387_v8  ;;  %v417_v21 = vld [vmem:[%s364_s4] sm:$0x3]  ;;  %s373_s21 = scalar_lea.vmem %s1284_s5, %s1174_s12  ;;  %s1050_s9 = smov 120  }
  0x26   : > { %s828_s16 = sshll.u32 %s333_s10, 1  ;;  %s645_s20 = sadd.s32 %s1026_s27, %s841_s13 }
  0x27   : > { %v406_v12 = vadd.f32 %v835_v5, %v396_v9  ;;  %v405_v13 = vadd.f32 %v835_v5, %v395_v10  ;;  %v407_v14 = vadd.f32 %v835_v5, %v397_v11  ;;  %s842_s11 = sshll.u32 %s645_s20, 5  ;;  %s335_s22 = scalar_lea.vmem [#allocation2], %s828_s16 }
  0x28   : > { %s649_s4 = sshll.u32 %s335_s22, 4  ;;  %s1218_s17 = scalar_lea.hbm %s1285_s6, %s842_s11  ;;  %s1220_s4 = int_to_ptr.vmem [resolvable:$true] %s649_s4 }
  0x29   : > { %vm409_vm4 = vcmp.gt.f32.partialorder %v406_v12, 0.0  ;;  %v412_v16 = vmul.f32 0.3, %v406_v12  ;;  %vm408_vm5 = vcmp.gt.f32.partialorder %v405_v13, 0.0  ;;  %v411_v17 = vmul.f32 0.3, %v405_v13 }
  0x2a   : > { %vm410_vm6 = vcmp.gt.f32.partialorder %v407_v14, 0.0  ;;  %v413_v18 = vmul.f32 0.3, %v407_v14  ;;  %s621_s27 = scalar_lea.sflag [#allocation3], %s333_s10  ;;  %s948_s28 = scalar_lea.vmem %s1220_s4, 32 }
  0x2b   : > { %v415_v19 = vsel %vm409_vm4, %v406_v12, %v412_v16  ;;  %v414_v20 = vsel %vm408_vm5, %v405_v13, %v411_v17  ;;  %p949_p1 = scmp.ne.s32.totalorder %s1220_s4, %s948_s28  ;;  %s1051_s18 = smov [#allocation2]  }
  0x2c   : > { %435 = vrot.lane.b32.xlu0 %v415_v19, %s1048_s30  ;;  %v423_v22 = vrot.slane %v415_v19, 7  ;;  %433 = vrot.lane.b32.xlu1 %v414_v20, %s1048_s30  ;;  %v422_v23 = vrot.slane %v414_v20, 7  ;;  %v416_v24 = vsel %vm410_vm6, %v407_v14, %v413_v18 }
  0x2d   : > { %v425_v25 = vrot.slane %v416_v24, 7  ;;  %p950_p2 = pnand %p949_p1, %p1143_p3 }
  0x2e   : > { %v424_v26 = vsel %vm421_vm7, %v422_v23, %v423_v22  ;;  %v431_v27 = vsel %vm421_vm7, %v417_v21, %v422_v23 }
  0x2f   : > { %v426_v28 = vsel %vm421_vm7, %v423_v22, %v425_v25  ;;  %v446_v29 = vrot.slane %v424_v26, 2  ;;  %v432_v30 = vsel %vm421_vm7, %v425_v25, %v417_v21  ;;  %v445_v33 = vrot.slane %v431_v27, 2  ;;  %p951_p4 = pneg %p950_p2 }
  0x30   : > { %437 = vrot.lane.b32.xlu1 %v416_v24, %s1048_s30  ;;  %v448_v31 = vrot.slane %v426_v28, 2  ;;  %v450_v32 = vrot.slane %v432_v30, 2 }
  0x31   : > { %v447_v36 = vsel %vm444_vm8, %v445_v33, %v446_v29 }
  0x32   : > { %v449_v34 = vsel %vm444_vm8, %v446_v29, %v448_v31  ;;  %v451_v35 = vsel %vm444_vm8, %v448_v31, %v450_v32 }
  0x33   : > { %454 = vrot.lane.b32.xlu0 %v449_v34, %s1049_s23 }
  0x34   : > { %456 = vrot.lane.b32.xlu1 %v451_v35, %s1049_s23 }
  0x37   : > { %452 = vrot.lane.b32.xlu0 %v447_v36, %s1049_s23 }
  0x9e   : > { %v434_v37 = vpop.permute.xlu1 %433  ;;  %v436_v38 = vpop.permute.xlu0 %435 }
  0x9f   : > { %v463_v40 = vsel %vm461_vm9, %v424_v26, %v436_v38  ;;  %v462_v46 = vsel %vm461_vm9, %v431_v27, %v434_v37 }
  0xa2   : > { %v438_v39 = vpop.permute.xlu1 %437 }
  0xa3   : > { %v464_v41 = vsel %vm461_vm9, %v426_v28, %v438_v39 }
  0xa5   : > { %v455_v42 = vpop.permute.xlu0 %454 }
  0xa6   : > { %v467_v43 = vsel %vm465_vm10, %v463_v40, %v455_v42  ;;  %v457_v44 = vpop.permute.xlu1 %456 }
  0xa7   : > { %858 = vmatmul.mubr.msk.f32.vlgmr.msra.gmra.mrb[0].mxu1 %vm471_vm11, %v467_v43  ;;  %v468_v45 = vsel %vm465_vm10, %v464_v41, %v457_v44 }
  0xa8   : > { %860 = vmatprep.mubr.msk.f32.mxu1 %vm1046_vm3, %v1047_v15 }
  0xa9   : > { %v453_v47 = vpop.permute.xlu0 %452 }
  0xaa   : > { %v466_v48 = vsel %vm465_vm10, %v462_v46, %v453_v47 }
  0xab   : > { %855 = vmatmul.mubr.msk.f32.vlgmr.msra.gmra.mrb[0].mxu0 %vm471_vm11, %v466_v48  ;;  %861 = vmatmul.mubr.msk.f32.gmra.mrb[2].mxu1 %vm471_vm11, %v468_v45 }
 0x17a   : > { %v556_v49 = vpop.f32.mrb[0].mxu1 }
 0x17b   : > { %594 = vst.msk [vmem:[%s373_s21 + $0x8] sm:$0xff] %vm465_vm10, %v556_v49  ;;  %601 = vrot.lane.b32.xlu1 %v556_v49, %s1050_s9  ;;  %v859_v50 = vpop.f32.mrb[1].mxu1  ;;  %v577_v51 = vmul.f32 %v556_v49, %v556_v49  ;;  %v566_v52 = vsel %vm465_vm10, %v556_v49, 0.0 }
 0x17d   : > { %v580_v62 = vsel %vm465_vm10, %v577_v51, 0.0 }
 0x17e   : > { %v551_v53 = vpop.f32.mrb[0].mxu0  ;;  %v561_v54 = vpop.f32.mrb[2].mxu1 }
 0x17f   : > { %v565_v55 = vsel %vm465_vm10, %v551_v53, 0.0  ;;  %v576_v56 = vmul.f32 %v551_v53, %v551_v53  ;;  %593 = vst.msk [vmem:[%s373_s21] sm:$0xff] %vm465_vm10, %v551_v53  ;;  %v568_v57 = vsel %vm465_vm10, %v561_v54, 0.0  ;;  %v578_v58 = vmul.f32 %v561_v54, %v561_v54  ;;  %595 = vst.msk [vmem:[%s373_s21 + $0x10] sm:$0xff] %vm465_vm10, %v561_v54  ;;  %v862_v59 = vpop.f32.mrb[3].mxu1  ;;  %599 = vrot.lane.b32.xlu0 %v551_v53, %s1050_s9  ;;  %v856_v60 = vpop.f32.mrb[1].mxu0 }
 0x180   : > { %v567_v61 = vadd.f32 %v566_v52, %v565_v55  ;;  %s952_s21 = sshll.u32 %s1051_s18, 4  ;;  %s953_s21 = int_to_ptr.vmem [resolvable:$false] %s952_s21 }
 0x181   : > { %v579_v63 = vsel %vm465_vm10, %v576_v56, 0.0  ;;  %v582_v0 = vsel %vm465_vm10, %v578_v58, 0.0  ;;  %p955_p5 = scmp.lt.s32.totalorder %s1220_s4, %s953_s21 }
 0x182   : > { %v581_v1 = vadd.f32 %v580_v62, %v579_v63  ;;  %v569_v2 = vadd.f32 %v568_v57, %v567_v61 }
 0x183   : > { %603 = vrot.lane.b32.xlu0 %v561_v54, %s1050_s9  ;;  %s954_s9 = scalar_lea.vmem %s953_s21, 64 }
 0x184   : > { %v570_v3 = vrot.slane %v569_v2, 4  ;;  %v583_v4 = vadd.f32 %v582_v0, %v581_v1  ;;  %p956_p6 = scmp.lt.s32.totalorder %s954_s9, %s948_s28 }
 0x186   : > { %v571_v5 = vadd.f32 %v570_v3, %v569_v2  ;;  %v584_v6 = vrot.slane %v583_v4, 4  ;;  %p957_p7 = por %p956_p6, %p955_p5 }
 0x188   : > { %v572_v7 = vrot.slane %v571_v5, 2  ;;  %v585_v8 = vadd.f32 %v584_v6, %v583_v4  ;;  %p958_p9 = pnand %p957_p7, %p951_p4 }
 0x18a   : > { %v573_v9 = vadd.f32 %v572_v7, %v571_v5  ;;  %v586_v10 = vrot.slane %v585_v8, 2 }
 0x18c   : > { %v574_v11 = vrot.slane %v573_v9, 1  ;;  %v587_v12 = vadd.f32 %v586_v10, %v585_v8 }
 0x18e   : > { %v588_v13 = vrot.slane %v587_v12, 1  ;;  %v575_v14 = vadd.f32 %v574_v11, %v573_v9 }
 0x190   : > { %v589_v15 = vadd.f32 %v588_v13, %v587_v12 }
 0x192   : > { %v590_v16 = vsel %vm421_vm7, %v575_v14, %v589_v15 }
 0x193   : > { %592 = vst.msk [vmem:[%s335_s22] sm:$0x3] %vm591_vm12, %v590_v16 }
 0x194   : > { %961 = shalt.err (!%p958_p9)
}
 0x195   : > { %s962_s10 = scalar_lea.hbm %s1218_s17, 32  ;;  %s966_s20 = scalar_lea.hbm %s1285_s6, 128 }
 0x196   : > { %p963_p10 = scmp.ne.s32.totalorder %s1218_s17, %s962_s10  ;;  %p967_p13 = scmp.lt.u32.totalorder %s1218_s17, %s1285_s6 }
 0x197   : > { %p968_p0 = scmp.lt.u32.totalorder %s966_s20, %s962_s10  ;;  %p970_p2 = scmp.lt.u32.totalorder %s962_s10, %s1218_s17 }
 0x198   : > { %p964_p11 = pnand %p963_p10, %p1143_p3 }
 0x199   : > { %p969_p1 = por %p968_p0, %p967_p13 }
 0x19a   : > { %p965_p12 = pneg %p964_p11 }
 0x19b   : > { %p971_p4 = por %p970_p2, %p969_p1 }
 0x19d   : > { %p972_p5 = pnand %p971_p4, %p965_p12 }
 0x19f   : > { %975 = shalt.err (!%p972_p5)
}
 0x1a0   : > { %870 = dma.vmem_to_hbm [thread:$0]  (%p1143_p3), %s1220_s4, 32, %s1218_s17, %s621_s27  }
 0x1a1   : > { %s383_s28 = scalar_lea.vmem %s1286_s7, %s1174_s12 }
 0x1ed   : > { %v602_v17 = vpop.permute.xlu1 %601 }
 0x1ee   : > { %609 = vst.msk [vmem:[%s383_s28 + $0x8] sm:$0xff] %vm465_vm10, %v602_v17 }
 0x1f1   : > { %v600_v18 = vpop.permute.xlu0 %599 }
 0x1f2   : > { %608 = vst.msk [vmem:[%s383_s28] sm:$0xff] %vm465_vm10, %v600_v18 }
 0x1f5   : > { %v604_v19 = vpop.permute.xlu0 %603 }
 0x1f6   : > { %610 = vst.msk [vmem:[%s383_s28 + $0x10] sm:$0xff] %vm465_vm10, %v604_v19 }
 0x1f7 PF: > { %p876_p6 = scmp.ge.s32.totalorder %s1042_s8, 2  ;;  %s677_s14 = sand.u32 1, %s1014_s24  }
 0x1f8   : > { %s678_s4 = scalar_lea.sflag [#allocation3], %s677_s14 }
 0x1f9   : > { %p873_p3 = pnand %p876_p6, %p1152_p8 }
 0x1fb   : > { %1009 = dma.done.wait (!%p873_p3), %s678_s4, 32  }
 0x1fc   : > { %1011 = vsyncadd (!%p873_p3), %s678_s4, 4294967264  ;;  %s21_s8 = sadd.s32 1, %s1042_s8   ;;  %s1297_s28 = sld [smem:[#allocation5_spill]] }
 0x1fd   : > { %p18_p7 = scmp.ge.s32.totalorder %s21_s8, 6   ;;  %s1298_s12 = sld [smem:[#allocation6_spill]] }
 0x1fe   : > { %s1299_s30 = sld [smem:[#allocation7_spill]]  ;;  %s1300_s24 = smov %s1018_s25 }
 0x1ff   : > { %s1301_s25 = smov %s1022_s26  ;;  %s1302_s26 = smov %s1161_s19 }
 0x200   : > { %s1303_s27 = smov %s1034_s29  ;;  %20 = sbr.rel (!%p18_p7) target bundleno = 7 (0x7), region = 102 }
 0x203   : > { %s1304_s29 = smov %s1298_s12 }
 0x207   :  { %695 = vsyncpa [#allocation3], 1 }
 0x208   :  { %697 = vsyncpa [#allocation3 + $0x1], 1 }

</bundles_post_ra>
